<compile_context>
chip_gen: v7x
topology: tpu7x:2x2x1
jax: 0.10.0
libtpu: 0.0.40
codegen_flags: <defaults>
</compile_context>

<pallas_src>
import functools

import jax
import jax.numpy as jnp
from jax.experimental import pallas as pl
from jax.experimental.pallas import tpu as pltpu


def _rope_kernel(c_ref, s1_ref, s2_ref, k_ref, q_ref, ko_ref, qo_ref,
                 c_sc, s1_sc, s2_sc, *, n_heads, half, lane_pad):
    """Apply RoPE to one (ts, H*D_pad) tile of k and q.

    c/s1/s2_ref : (ts, D) per-head f32 tables (cos, -sin on x1 lanes, +sin on x2 lanes).
    k/q refs    : (ts, H*D_pad) tiles (batch dim squeezed by BlockSpec).
    *_sc        : (ts, H*D_pad) f32 scratch holding the head-replicated tables.
    """
    hd_pad = c_sc.shape[-1]

    # Build the expanded lane tables once per sequence tile (batch index == 0).
    # The scratch persists across the inner ("arbitrary") batch axis, so the
    # expansion (and the tiny table DMA) is amortized over all batches.
    @pl.when(pl.program_id(1) == 0)
    def _build_tables():
        ts = c_ref.shape[0]
        zpad = [jnp.zeros((ts, lane_pad), jnp.float32)] if lane_pad else []
        c_sc[...] = jnp.concatenate([c_ref[...]] * n_heads + zpad, axis=-1)
        s1_sc[...] = jnp.concatenate([s1_ref[...]] * n_heads + zpad, axis=-1)
        s2_sc[...] = jnp.concatenate([s2_ref[...]] * n_heads + zpad, axis=-1)

    c = c_sc[...]
    s1 = s1_sc[...]
    s2 = s2_sc[...]

    def apply(x_ref, o_ref):
        x = x_ref[...].astype(jnp.float32)
        # p1[l] = x[(l + half) % hd_pad]  -> "x2" partner for the x1 lanes.
        p1 = pltpu.roll(x, hd_pad - half, axis=1)
        # p2[l] = x[(l - half) % hd_pad]  -> "x1" partner for the x2 lanes.
        p2 = pltpu.roll(x, half, axis=1)
        # Wrap-around lanes of the rolls only ever land where s1/s2 == 0.
        o_ref[...] = (x * c + p1 * s1 + p2 * s2).astype(o_ref.dtype)

    apply(k_ref, ko_ref)
    apply(q_ref, qo_ref)


def rotary_positional_embedding(k, q, d_rope, scale=40.0):
    """Matches RotaryPositionalEmbedding.forward: returns (k_rotary, q_rotary)."""
    B, S, H, D = q.shape
    assert k.shape == q.shape
    assert d_rope % 2 == 0, "d_rope must be even"
    d_rot = d_rope // 2                 # width of the rotated slice per head
    assert d_rot % 2 == 0, "d_rope must be a multiple of 4"
    assert D >= d_rot
    half = d_rot // 2

    # ---- tiny per-head tables (S, D) in f32 — exactly the module's math ----
    inv_freq = 1.0 / (10000.0 ** (
        jnp.arange(0, d_rot, 2, dtype=jnp.float32) / d_rot))
    t = jnp.arange(S, dtype=jnp.float32) / scale
    freqs = t[:, None] * inv_freq[None, :]                   # (S, d_rot//2)
    rotation = jnp.concatenate([freqs, freqs], axis=-1)      # (S, d_rot)
    cos = jnp.cos(rotation)
    sin = jnp.sin(rotation)

    tail = D - d_rot
    zeros_half = jnp.zeros((S, half), jnp.float32)
    tail_ones = [jnp.ones((S, tail), jnp.float32)] if tail else []
    tail_zeros = [jnp.zeros((S, tail), jnp.float32)] if tail else []
    c_head = jnp.concatenate([cos] + tail_ones, axis=-1)                          # (S, D)
    s1_head = jnp.concatenate([-sin[:, :half], zeros_half] + tail_zeros, axis=-1)  # x1 lanes
    s2_head = jnp.concatenate([zeros_half, sin[:, half:]] + tail_zeros, axis=-1)   # x2 lanes

    # ---- lane-dense payload layout: (B, S, H*D), padded to a multiple of 128 ----
    hd = H * D
    hd_pad = ((hd + 127) // 128) * 128
    lane_pad = hd_pad - hd
    k2 = k.reshape(B, S, hd)            # contiguous reshape: no data movement
    q2 = q.reshape(B, S, hd)
    if lane_pad:
        # TODO(synk): one extra XLA pad/slice copy of k/q when H*D % 128 != 0;
        # still far cheaper than lane-sparse masked stores inside the kernel.
        pad_cfg = ((0, 0), (0, 0), (0, lane_pad))
        k2 = jnp.pad(k2, pad_cfg)
        q2 = jnp.pad(q2, pad_cfg)

    # ---- generation-aware tiling: VMEM budget -> sequence-tile rows ----
    try:
        vmem_cap = int(pltpu.get_tpu_info().vmem_capacity_bytes)
    except Exception:
        vmem_cap = 64 * 1024 * 1024     # conservative (v7x per-core VMEM)
    vmem_limit = int(min(vmem_cap - 16 * 1024 * 1024, 100 * 1024 * 1024))
    budget = (vmem_limit * 3) // 4      # headroom for compiler scratch/spills

    dtype_bytes = max(jnp.dtype(k.dtype).itemsize, jnp.dtype(q.dtype).itemsize)
    per_row = (4 * 2 * hd_pad * dtype_bytes     # k,q in + k,q out, double-buffered
               + 3 * 2 * D * 4                  # per-head tables, double-buffered
               + 3 * hd_pad * 4)                # replicated-table VMEM scratch
    if S <= 8:
        ts = S
    else:
        ts = min(budget // per_row, 1024, S)
        # Keep >= ~4 grid steps when possible (pipelining + v7x second core),
        # but never drop below the ~256-row HBM-roofline sweet spot.
        while ts > 256 and ((S + ts - 1) // ts) * B < 4:
            ts //= 2
        ts = max(8, (ts // 8) * 8)
    n_s = (S + ts - 1) // ts

    tab_spec = pl.BlockSpec((ts, D), lambda s, b: (s, 0))
    x_spec = pl.BlockSpec((None, ts, hd_pad), lambda s, b: (b, s, 0))

    kernel = functools.partial(_rope_kernel, n_heads=H, half=half,
                               lane_pad=lane_pad)

    ko2, qo2 = pl.pallas_call(
        kernel,
        out_shape=(jax.ShapeDtypeStruct((B, S, hd_pad), k.dtype),
                   jax.ShapeDtypeStruct((B, S, hd_pad), q.dtype)),
        grid_spec=pltpu.PrefetchScalarGridSpec(
            num_scalar_prefetch=0,
            grid=(n_s, B),              # batch innermost: scratch tables stay valid
            in_specs=[tab_spec, tab_spec, tab_spec, x_spec, x_spec],
            out_specs=[x_spec, x_spec],
            scratch_shapes=[pltpu.VMEM((ts, hd_pad), jnp.float32)] * 3,
        ),
        compiler_params=pltpu.CompilerParams(
            # batch axis must stay sequential ("arbitrary") so the pl.when(b==0)
            # table build is seen before every batch that reuses the scratch.
            dimension_semantics=("parallel", "arbitrary"),
            vmem_limit_bytes=vmem_limit,
        ),
    )(c_head, s1_head, s2_head, k2, q2)

    if lane_pad:
        ko2 = ko2[:, :, :hd]
        qo2 = qo2[:, :, :hd]
    return ko2.reshape(B, S, H, D), qo2.reshape(B, S, H, D)


def _reference(k, q, d_rope, scale=40.0):
    # Pure-JAX reference mirroring the PyTorch module.
    B, S, H, D = q.shape
    d_rot = d_rope // 2
    inv_freq = 1.0 / (10000.0 ** (jnp.arange(0, d_rot, 2, dtype=jnp.float32) / d_rot))
    t = jnp.arange(S, dtype=jnp.float32) / scale
    freqs = t[:, None] * inv_freq[None, :]
    rotation = jnp.concatenate([freqs, freqs], axis=-1)
    cos = jnp.cos(rotation).reshape(1, S, 1, -1)
    sin = jnp.sin(rotation).reshape(1, S, 1, -1)
    w = cos.shape[-1]

    def rotate_half(x):
        h = x.shape[-1] // 2
        return jnp.concatenate([-x[..., h:], x[..., :h]], axis=-1)

    def apply_rotary(x):
        x_rot, x_base = x[..., :w], x[..., w:]
        x_rot = x_rot * cos + rotate_half(x_rot) * sin
        return jnp.concatenate([x_rot, x_base], axis=-1)

    return apply_rotary(k), apply_rotary(q)


if __name__ == "__main__":
    B, S, H, d_rope = 2, 8, 4, 32     # q/k last dim == d_rope (as forward unpacks)
    key = jax.random.PRNGKey(0)
    kk, kq = jax.random.split(key)
    k = jax.random.normal(kk, (B, S, H, d_rope), dtype=jnp.float32)
    q = jax.random.normal(kq, (B, S, H, d_rope), dtype=jnp.float32)

    fwd = jax.jit(functools.partial(rotary_positional_embedding, d_rope=d_rope))
    ko, qo = fwd(k, q)
    jax.block_until_ready((ko, qo))

    ko_ref, qo_ref = _reference(k, q, d_rope)
    assert jnp.allclose(ko, ko_ref, atol=1e-5, rtol=1e-5), "k mismatch"
    assert jnp.allclose(qo, qo_ref, atol=1e-5, rtol=1e-5), "q mismatch"

    print("KERNEL_OK")
</pallas_src>

<mosaic_0001>
module attributes {stable_mosaic.version = 11 : i64} {
  func.func @_rope_kernel(%arg0: i32, %arg1: i32, %arg2: memref<8x32xf32, #tpu.memory_space<vmem>>, %arg3: memref<8x32xf32, #tpu.memory_space<vmem>>, %arg4: memref<8x32xf32, #tpu.memory_space<vmem>>, %arg5: memref<1x8x128xf32, #tpu.memory_space<vmem>>, %arg6: memref<1x8x128xf32, #tpu.memory_space<vmem>>, %arg7: memref<1x8x128xf32, #tpu.memory_space<vmem>>, %arg8: memref<1x8x128xf32, #tpu.memory_space<vmem>>, %arg9: memref<8x128xf32, #tpu.memory_space<vmem>>, %arg10: memref<8x128xf32, #tpu.memory_space<vmem>>, %arg11: memref<8x128xf32, #tpu.memory_space<vmem>>) attributes {dimension_semantics = [#tpu.dimension_semantics<parallel>, #tpu.dimension_semantics<arbitrary>], iteration_bounds = array<i64: 1, 2>, scalar_prefetch = 0 : i64, scratch_operands = 3 : i64, tpu.core_type = #tpu.core_type<tc>, window_params = [{transform_indices = @transform_0, window_bounds = array<i64: 8, 32>}, {transform_indices = @transform_1, window_bounds = array<i64: 8, 32>}, {transform_indices = @transform_2, window_bounds = array<i64: 8, 32>}, {transform_indices = @transform_3, window_bounds = array<i64: 1, 8, 128>}, {transform_indices = @transform_4, window_bounds = array<i64: 1, 8, 128>}, {transform_indices = @transform_5, window_bounds = array<i64: 1, 8, 128>}, {transform_indices = @transform_6, window_bounds = array<i64: 1, 8, 128>}]} {
    %c0_i32 = arith.constant 0 : i32
    %0 = arith.cmpi eq, %arg1, %c0_i32 : i32
    %1 = arith.extui %0 : i1 to i32
    %c0_i32_0 = arith.constant 0 : i32
    %2 = arith.cmpi ne, %1, %c0_i32_0 : i32
    scf.if %2 {
      %c0_20 = arith.constant 0 : index
      %c0_21 = arith.constant 0 : index
      %30 = vector.load %arg2[%c0_20, %c0_21] : memref<8x32xf32, #tpu.memory_space<vmem>>, vector<8x32xf32>
      %31 = tpu.concatenate %30, %30, %30, %30 in 1 : vector<8x32xf32>, vector<8x32xf32>, vector<8x32xf32>, vector<8x32xf32> -> vector<8x128xf32>
      %c0_22 = arith.constant 0 : index
      %c0_23 = arith.constant 0 : index
      %32 = vector.load %arg9[%c0_22, %c0_23] : memref<8x128xf32, #tpu.memory_space<vmem>>, vector<8x128xf32>
      tpu.vector_store %arg9[%c0_22, %c0_23], %31 {strides = array<i32>} : memref<8x128xf32, #tpu.memory_space<vmem>>, vector<8x128xf32>,
      %c0_24 = arith.constant 0 : index
      %c0_25 = arith.constant 0 : index
      %33 = vector.load %arg3[%c0_24, %c0_25] : memref<8x32xf32, #tpu.memory_space<vmem>>, vector<8x32xf32>
      %34 = tpu.concatenate %33, %33, %33, %33 in 1 : vector<8x32xf32>, vector<8x32xf32>, vector<8x32xf32>, vector<8x32xf32> -> vector<8x128xf32>
      %c0_26 = arith.constant 0 : index
      %c0_27 = arith.constant 0 : index
      %35 = vector.load %arg10[%c0_26, %c0_27] : memref<8x128xf32, #tpu.memory_space<vmem>>, vector<8x128xf32>
      tpu.vector_store %arg10[%c0_26, %c0_27], %34 {strides = array<i32>} : memref<8x128xf32, #tpu.memory_space<vmem>>, vector<8x128xf32>,
      %c0_28 = arith.constant 0 : index
      %c0_29 = arith.constant 0 : index
      %36 = vector.load %arg4[%c0_28, %c0_29] : memref<8x32xf32, #tpu.memory_space<vmem>>, vector<8x32xf32>
      %37 = tpu.concatenate %36, %36, %36, %36 in 1 : vector<8x32xf32>, vector<8x32xf32>, vector<8x32xf32>, vector<8x32xf32> -> vector<8x128xf32>
      %c0_30 = arith.constant 0 : index
      %c0_31 = arith.constant 0 : index
      %38 = vector.load %arg11[%c0_30, %c0_31] : memref<8x128xf32, #tpu.memory_space<vmem>>, vector<8x128xf32>
      tpu.vector_store %arg11[%c0_30, %c0_31], %37 {strides = array<i32>} : memref<8x128xf32, #tpu.memory_space<vmem>>, vector<8x128xf32>,
    } else {
    }
    %c0 = arith.constant 0 : index
    %c0_1 = arith.constant 0 : index
    %3 = vector.load %arg9[%c0, %c0_1] : memref<8x128xf32, #tpu.memory_space<vmem>>, vector<8x128xf32>
    %c0_2 = arith.constant 0 : index
    %c0_3 = arith.constant 0 : index
    %4 = vector.load %arg10[%c0_2, %c0_3] : memref<8x128xf32, #tpu.memory_space<vmem>>, vector<8x128xf32>
    %c0_4 = arith.constant 0 : index
    %c0_5 = arith.constant 0 : index
    %5 = vector.load %arg11[%c0_4, %c0_5] : memref<8x128xf32, #tpu.memory_space<vmem>>, vector<8x128xf32>
    %c0_6 = arith.constant 0 : index
    %c0_7 = arith.constant 0 : index
    %c0_8 = arith.constant 0 : index
    %6 = vector.load %arg5[%c0_6, %c0_7, %c0_8] : memref<1x8x128xf32, #tpu.memory_space<vmem>>, vector<1x8x128xf32>
    %7 = vector.shape_cast %6 : vector<1x8x128xf32> to vector<8x128xf32>
    %c120_i32 = arith.constant 120 : i32
    %8 = tpu.dynamic_rotate %7 by %c120_i32 dim 1 : vector<8x128xf32>, i32 -> vector<8x128xf32>
    %c8_i32 = arith.constant 8 : i32
    %9 = tpu.dynamic_rotate %7 by %c8_i32 dim 1 : vector<8x128xf32>, i32 -> vector<8x128xf32>
    %10 = arith.mulf %7, %3 : vector<8x128xf32>
    %11 = arith.mulf %8, %4 : vector<8x128xf32>
    %12 = arith.addf %10, %11 : vector<8x128xf32>
    %13 = arith.mulf %9, %5 : vector<8x128xf32>
    %14 = arith.addf %12, %13 : vector<8x128xf32>
    %c0_9 = arith.constant 0 : index
    %c0_10 = arith.constant 0 : index
    %c0_11 = arith.constant 0 : index
    %15 = vector.load %arg7[%c0_9, %c0_10, %c0_11] : memref<1x8x128xf32, #tpu.memory_space<vmem>>, vector<1x8x128xf32>
    %16 = vector.shape_cast %15 : vector<1x8x128xf32> to vector<8x128xf32>
    %17 = vector.shape_cast %14 : vector<8x128xf32> to vector<1x8x128xf32>
    tpu.vector_store %arg7[%c0_9, %c0_10, %c0_11], %17 {strides = array<i32>} : memref<1x8x128xf32, #tpu.memory_space<vmem>>, vector<1x8x128xf32>,
    %c0_12 = arith.constant 0 : index
    %c0_13 = arith.constant 0 : index
    %c0_14 = arith.constant 0 : index
    %18 = vector.load %arg6[%c0_12, %c0_13, %c0_14] : memref<1x8x128xf32, #tpu.memory_space<vmem>>, vector<1x8x128xf32>
    %19 = vector.shape_cast %18 : vector<1x8x128xf32> to vector<8x128xf32>
    %c120_i32_15 = arith.constant 120 : i32
    %20 = tpu.dynamic_rotate %19 by %c120_i32_15 dim 1 : vector<8x128xf32>, i32 -> vector<8x128xf32>
    %c8_i32_16 = arith.constant 8 : i32
    %21 = tpu.dynamic_rotate %19 by %c8_i32_16 dim 1 : vector<8x128xf32>, i32 -> vector<8x128xf32>
    %22 = arith.mulf %19, %3 : vector<8x128xf32>
    %23 = arith.mulf %20, %4 : vector<8x128xf32>
    %24 = arith.addf %22, %23 : vector<8x128xf32>
    %25 = arith.mulf %21, %5 : vector<8x128xf32>
    %26 = arith.addf %24, %25 : vector<8x128xf32>
    %c0_17 = arith.constant 0 : index
    %c0_18 = arith.constant 0 : index
    %c0_19 = arith.constant 0 : index
    %27 = vector.load %arg8[%c0_17, %c0_18, %c0_19] : memref<1x8x128xf32, #tpu.memory_space<vmem>>, vector<1x8x128xf32>
    %28 = vector.shape_cast %27 : vector<1x8x128xf32> to vector<8x128xf32>
    %29 = vector.shape_cast %26 : vector<8x128xf32> to vector<1x8x128xf32>
    tpu.vector_store %arg8[%c0_17, %c0_18, %c0_19], %29 {strides = array<i32>} : memref<1x8x128xf32, #tpu.memory_space<vmem>>, vector<1x8x128xf32>,
    return
  }
  func.func @transform_0(%arg0: i32, %arg1: i32) -> (i32, i32) {
    %c0_i32 = arith.constant 0 : i32
    %c0_i32_0 = arith.constant 0 : i32
    return %arg0, %c0_i32 : i32, i32
  }
  func.func @transform_1(%arg0: i32, %arg1: i32) -> (i32, i32) {
    %c0_i32 = arith.constant 0 : i32
    %c0_i32_0 = arith.constant 0 : i32
    return %arg0, %c0_i32 : i32, i32
  }
  func.func @transform_2(%arg0: i32, %arg1: i32) -> (i32, i32) {
    %c0_i32 = arith.constant 0 : i32
    %c0_i32_0 = arith.constant 0 : i32
    return %arg0, %c0_i32 : i32, i32
  }
  func.func @transform_3(%arg0: i32, %arg1: i32) -> (i32, i32, i32) {
    %c0_i32 = arith.constant 0 : i32
    %c0_i32_0 = arith.constant 0 : i32
    return %arg1, %arg0, %c0_i32 : i32, i32, i32
  }
  func.func @transform_4(%arg0: i32, %arg1: i32) -> (i32, i32, i32) {
    %c0_i32 = arith.constant 0 : i32
    %c0_i32_0 = arith.constant 0 : i32
    return %arg1, %arg0, %c0_i32 : i32, i32, i32
  }
  func.func @transform_5(%arg0: i32, %arg1: i32) -> (i32, i32, i32) {
    %c0_i32 = arith.constant 0 : i32
    %c0_i32_0 = arith.constant 0 : i32
    return %arg1, %arg0, %c0_i32 : i32, i32, i32
  }
  func.func @transform_6(%arg0: i32, %arg1: i32) -> (i32, i32, i32) {
    %c0_i32 = arith.constant 0 : i32
    %c0_i32_0 = arith.constant 0 : i32
    return %arg1, %arg0, %c0_i32 : i32, i32, i32
  }
}

</mosaic_0001>

<bundles_post_ra>
// kernel: rotary_positional_embedding.1
= control target key start
LH: loop header
LB: loop body
LE: loop exit
PB: predicated region body
PF: predicated region fallthrough
CT: control target
= control target key end

     0   :  { %s737_s21 = smov 0   ;;  %s739_s22 = smov 0   ;;  %s811_s0 = inlined_call_operand.vmem [shape: f32[8,32], index: 0, kind: input, shape index: {}]   ;;  %s812_s1 = inlined_call_operand.vmem [shape: f32[8,32], index: 1, kind: input, shape index: {}]   ;;  %s813_s2 = inlined_call_operand.vmem [shape: f32[8,32], index: 2, kind: input, shape index: {}]   ;;  %s814_s3 = inlined_call_operand.vmem [shape: f32[2,8,128], index: 3, kind: input, shape index: {}]   ;;  %s815_s4 = inlined_call_operand.vmem [shape: f32[2,8,128], index: 4, kind: input, shape index: {}]   ;;  %s816_s5 = inlined_call_operand.vmem [shape: f32[2,8,128], index: 5, kind: output, shape index: {0}]   ;;  %s817_s6 = inlined_call_operand.vmem [shape: f32[2,8,128], index: 6, kind: output, shape index: {1}]  }
   0x1   :  { %s741_s23 = smov 0  }
   0x2 LB: > { %s26_s24 = sadd.s32 1, %s691_s22  ;;  %p636_p0 = scmp.ge.s32.totalorder %s695_s23, 1  ;;  %s695_s23 = sphi %s741_s23, %s17_s23   ;;  %s691_s22 = sphi %s739_s22, %s819_s22   ;;  %s687_s21 = sphi %s737_s21, %s818_s21  }
   0x3   : > { %p27_p1 = scmp.ge.s32.totalorder %s26_s24, 2  ;;  %p276_p2 = scmp.lt.s32.totalorder %s695_s23, 3 }
   0x5   : > { %s821_s24 = smov (%p27_p1, %s26_s24), 0  ;;  %p277_p3 = pnand %p636_p0, %p276_p2 }
   0x6   : > { %p348_p4 = scmp.lt.s32.totalorder (!%p277_p3), %s687_s21, 1  ;;  %p641_p5 = scmp.ne.s32.totalorder (!%p277_p3), %s687_s21, 0 }
   0x7   : > { %280 = sbr.rel (%p277_p3) target bundleno = 277 (0x115), region = 40 }
   0xe   : > { %s349_s25 = scalar_select %p348_p4, %s687_s21, 1 }
   0xf   : > { %379 = sbr.rel (%p641_p5) target bundleno = 150 (0x96), region = 44  ;;  %v413_v0 = vld [vmem:[%s813_s2] sm:$0xff] (!%p641_p5)  ;;  %s697_s19 = smov (!%p641_p5), 32   ;;  %vm391_vm0 = vcmask (!%p641_p5), 261120   ;;  %vm393_vm1 = vcmask (!%p641_p5), 523264   ;;  %vm395_vm2 = vcmask (!%p641_p5), 785408  }
  0x10   : > { %s755_s26 = sshll.u32 %s349_s25, 3  ;;  %v380_v1 = vld [vmem:[%s811_s0] sm:$0xff] (!%p641_p5)  ;;  %415 = vrot.lane.b32.xlu1 (!%p641_p5), %v413_v0, %s697_s19  ;;  %s698_s27 = smov (!%p641_p5), 64  }
  0x11   : > { %s354_s29 = scalar_lea.vmem %s814_s3, %s755_s26  ;;  %s361_s8 = scalar_lea.vmem %s815_s4, %s755_s26  ;;  %382 = vrot.lane.b32.xlu0 (!%p641_p5), %v380_v1, %s697_s19  ;;  %v398_v2 = vld [vmem:[%s812_s1] sm:$0xff] (!%p641_p5) }
  0x12   : > { %s368_s11 = scalar_lea.vmem %s816_s5, %s755_s26  ;;  %s375_s14 = scalar_lea.vmem %s817_s6, %s755_s26 }
  0x13   : > { %s699_s21 = smov (!%p641_p5), 96  }
  0x14   : > { %385 = vrot.lane.b32.xlu1 (!%p641_p5), %v380_v1, %s698_s27 }
  0x15   : > { %400 = vrot.lane.b32.xlu0 (!%p641_p5), %v398_v2, %s697_s19 }
  0x18   : > { %418 = vrot.lane.b32.xlu1 %v413_v0, %s698_s27 }
  0x19   : > { %403 = vrot.lane.b32.xlu0 %v398_v2, %s698_s27 }
  0x1c   : > { %406 = vrot.lane.b32.xlu1 %v398_v2, %s699_s21 }
  0x1d   : > { %388 = vrot.lane.b32.xlu0 %v380_v1, %s699_s21 }
  0x21   : > { %421 = vrot.lane.b32.xlu0 %v413_v0, %s699_s21 }
  0x82   : > { %v416_v3 = vpop.permute.xlu1 %415 }
  0x83   : > { %v383_v4 = vpop.permute.xlu0 %382  ;;  %v424_v17 = vsel %vm391_vm0, %v413_v0, %v416_v3 }
  0x84   : > { %v392_v9 = vsel %vm391_vm0, %v380_v1, %v383_v4 }
  0x86   : > { %v386_v5 = vpop.permute.xlu1 %385 }
  0x87   : > { %v401_v6 = vpop.permute.xlu0 %400  ;;  %v394_v11 = vsel %vm393_vm1, %v392_v9, %v386_v5 }
  0x88   : > { %v409_v10 = vsel %vm391_vm0, %v398_v2, %v401_v6 }
  0x8a   : > { %v419_v7 = vpop.permute.xlu1 %418 }
  0x8b   : > { %v404_v8 = vpop.permute.xlu0 %403  ;;  %v425_v18 = vsel %vm393_vm1, %v424_v17, %v419_v7 }
  0x8c   : > { %v410_v12 = vsel %vm393_vm1, %v409_v10, %v404_v8 }
  0x8e   : > { %v407_v13 = vpop.permute.xlu1 %406 }
  0x8f   : > { %v389_v14 = vpop.permute.xlu0 %388  ;;  %v411_v15 = vsel %vm395_vm2, %v410_v12, %v407_v13 }
  0x90   : > { %v396_v16 = vsel %vm395_vm2, %v394_v11, %v389_v14  ;;  %412 = vst [vmem:[#allocation3] sm:$0xff] %v411_v15 }
  0x91   : > { %397 = vst [vmem:[#allocation2] sm:$0xff] %v396_v16 }
  0x93   : > { %v422_v19 = vpop.permute.xlu0 %421 }
  0x94   : > { %v426_v20 = vsel %vm395_vm2, %v425_v18, %v422_v19 }
  0x95   : > { %427 = vst [vmem:[#allocation4] sm:$0xff] %v426_v20 }
  0x96 PF: > { %v431_v21 = vld [vmem:[%s354_s29] sm:$0xff]  ;;  %s700_s7 = smov 120   ;;  %s701_s9 = smov 8  }
  0x97   : > { %432 = vrot.lane.b32.xlu0 %v431_v21, %s700_s7  ;;  %434 = vrot.lane.b32.xlu1 %v431_v21, %s701_s9  ;;  %v442_v22 = vld [vmem:[%s361_s8] sm:$0xff]  ;;  %v429_v24 = vld [vmem:[#allocation3] sm:$0xff] }
  0x98   : > { %v428_v23 = vld [vmem:[#allocation2] sm:$0xff] }
  0x99   : > { %v436_v26 = vmul.f32 %v431_v21, %v428_v23  ;;  %v447_v31 = vmul.f32 %v442_v22, %v428_v23 }
  0x9b   : > { %443 = vrot.lane.b32.xlu0 %v442_v22, %s700_s7  ;;  %445 = vrot.lane.b32.xlu1 %v442_v22, %s701_s9 }
  0x9c   : > { %v430_v25 = vld [vmem:[#allocation4] sm:$0xff] }
 0x109   : > { %v433_v27 = vpop.permute.xlu0 %432  ;;  %v435_v28 = vpop.permute.xlu1 %434 }
 0x10a   : > { %v437_v29 = vmul.f32 %v433_v27, %v429_v24  ;;  %v439_v30 = vmul.f32 %v435_v28, %v430_v25 }
 0x10c   : > { %v438_v32 = vadd.f32 %v437_v29, %v436_v26 }
 0x10d   : > { %v444_v33 = vpop.permute.xlu0 %443  ;;  %v446_v34 = vpop.permute.xlu1 %445 }
 0x10e   : > { %v440_v35 = vadd.f32 %v439_v30, %v438_v32  ;;  %v448_v36 = vmul.f32 %v444_v33, %v429_v24  ;;  %v450_v37 = vmul.f32 %v446_v34, %v430_v25 }
 0x110   : > { %441 = vst [vmem:[%s368_s11] sm:$0xff] %v440_v35  ;;  %v449_v38 = vadd.f32 %v448_v36, %v447_v31 }
 0x112   : > { %v451_v39 = vadd.f32 %v450_v37, %v449_v38 }
 0x114   : > { %452 = vst [vmem:[%s375_s14] sm:$0xff] %v451_v39 }
 0x115 PF: > { %s17_s23 = sadd.s32 1, %s695_s23   ;;  %s818_s21 = smov %s691_s22 }
 0x116   : > { %p14_p6 = scmp.ge.s32.totalorder %s17_s23, 4   ;;  %s819_s22 = smov %s821_s24 }
 0x118   :  { %16 = sbr.rel (!%p14_p6) target bundleno = 2 (0x2), region = 98 }

</bundles_post_ra>
